<compile_context>
chip_gen: v6e
topology: v6e:2x2x1
jax: 0.10.0
libtpu: 0.0.40
codegen_flags: <defaults>
</compile_context>

<pallas_src>
import functools

import jax
import jax.numpy as jnp
from jax import lax
from jax.experimental import pallas as pl
from jax.experimental.pallas import tpu as pltpu

LANES = 128
DEFAULT_BLOCK_ROWS = 4096  # 4096 x 128 x 4B = 2 MiB per f32 input buffer


def _round_up(x, m):
    return ((x + m - 1) // m) * m


def _focal_loss_kernel(x_ref, t_ref, psum_ref, *, gamma, binary_targets,
                       last_block_valid_rows):
    """One grid step: focal loss over a (block_rows, 128) tile -> one partial sum."""
    p = x_ref[...].astype(jnp.float32)
    t = t_ref[...].astype(jnp.float32)

    if binary_targets:
        # Hard {0,1} targets: q = prob. of the true class; bce = -log q
        # (clamped at 100 like PyTorch); exp(-bce) == q except below e^-100,
        # where the focal weight saturates to 1 anyway.
        # 1 transcendental / element instead of 3 (keeps v7x DMA-limited).
        q = jnp.where(t >= 0.5, p, 1.0 - p)
        bce = -jnp.maximum(jnp.log(q), jnp.float32(-100.0))
        pt = q
    else:
        # Exact PyTorch binary_cross_entropy (no logits): each log term is
        # clamped at -100 *before* the multiply, so 0*log(0) stays finite.
        log_p = jnp.maximum(jnp.log(p), jnp.float32(-100.0))
        log_1mp = jnp.maximum(jnp.log(1.0 - p), jnp.float32(-100.0))
        bce = -(t * log_p + (1.0 - t) * log_1mp)
        pt = jnp.exp(-bce)

    w = 1.0 - pt
    g = float(gamma)
    if g == 2.0:
        mod = w * w  # VALU square: no EUP pow, no pow(0) edge case at pt == 1
    elif g.is_integer() and g >= 0.0:
        gi = int(g)
        mod = jnp.ones_like(w) if gi == 0 else functools.reduce(
            lambda acc, _: acc * w, range(gi - 1), w)
    else:
        mod = w ** jnp.float32(g)

    contrib = mod * bce  # alpha folded into the wrapper-side normalization

    def _block_sum(c):
        # Two-stage reduce (lane axis, then the (rows,1) column): well-shaped
        # XLU work and bounded f32 accumulation error for big blocks.
        return jnp.sum(jnp.sum(c, axis=1, keepdims=True))

    if last_block_valid_rows is None:
        psum_ref[0, 0] = _block_sum(contrib)
    else:
        last = pl.num_programs(0) - 1

        @pl.when(pl.program_id(0) != last)
        def _():
            psum_ref[0, 0] = _block_sum(contrib)

        @pl.when(pl.program_id(0) == last)
        def _():
            # Rows past the array end hold unspecified data (Pallas pads the
            # boundary block); use a select (not a multiply) so any NaN/Inf
            # produced from that garbage cannot leak into the sum.
            row_id = lax.broadcasted_iota(jnp.int32, contrib.shape, 0)
            masked = jnp.where(row_id < last_block_valid_rows, contrib, 0.0)
            psum_ref[0, 0] = _block_sum(masked)


def focal_loss(inputs, targets, alpha=1.0, gamma=2.0, *, binary_targets=False,
               block_rows=DEFAULT_BLOCK_ROWS):
    """Focal loss with logits=False, reduce=True (mean). Returns a scalar (f32)."""
    n_total = inputs.size

    # Keep natural dtypes (narrower dtypes stream fewer HBM bytes); the kernel
    # upcasts to f32 in-register.
    x = inputs.reshape(-1)
    t = targets.reshape(-1)

    rem = n_total % LANES
    if rem:
        # Rare non-lane-aligned fallback: pad the <128-element remainder with
        # zeros (zeros contribute exactly 0 to the focal sum in both paths).
        pad = LANES - rem
        x = jnp.pad(x, (0, pad))
        t = jnp.pad(t, (0, pad))
    rows = x.size // LANES
    x2d = x.reshape(rows, LANES)  # zero-copy for lane-aligned inputs
    t2d = t.reshape(rows, LANES)

    # Row-block alignment required by the narrowest dtype's sublane packing:
    # 4B -> 8, 2B -> 16, 1B -> 32 rows.
    align = max(8, 32 // min(x2d.dtype.itemsize, t2d.dtype.itemsize))

    if rows <= 4 * align:
        # Tiny input: one full-extent block (any row count is legal then).
        eff_block_rows = rows
    else:
        # >= 4 blocks: keeps the input pipeline busy and gives v7x's two
        # TensorCores at least 2 blocks each for medium inputs.
        eff_block_rows = max(align,
                             min(int(block_rows),
                                 _round_up(pl.cdiv(rows, 4), align)))

    num_blocks = pl.cdiv(rows, eff_block_rows)
    rem_rows = rows % eff_block_rows
    last_block_valid_rows = rem_rows if rem_rows else None

    kernel = functools.partial(
        _focal_loss_kernel,
        gamma=float(gamma),
        binary_targets=bool(binary_targets),
        last_block_valid_rows=last_block_valid_rows)

    # VMEM budget: 2 pipeline buffers per input + generous headroom for
    # full-block f32 temporaries.  ~36 MiB at the 4096-row default: above
    # v5e's 16 MiB scoped default, well inside v7x's 64 MiB physical VMEM.
    block_elems = eff_block_rows * LANES
    vmem_limit = int(2 * block_elems * (x2d.dtype.itemsize + t2d.dtype.itemsize)
                     + 12 * block_elems * 4 + (4 << 20))
    vmem_limit = max(vmem_limit, 16 << 20)

    psums = pl.pallas_call(
        kernel,
        out_shape=jax.ShapeDtypeStruct((num_blocks, 1), jnp.float32),
        grid_spec=pltpu.PrefetchScalarGridSpec(
            num_scalar_prefetch=0,
            grid=(num_blocks,),
            in_specs=[
                pl.BlockSpec((eff_block_rows, LANES), lambda i: (i, 0)),
                pl.BlockSpec((eff_block_rows, LANES), lambda i: (i, 0)),
            ],
            out_specs=pl.BlockSpec(
                (1, 1), lambda i: (i, 0), memory_space=pltpu.MemorySpace.SMEM
            ),
        ),
        compiler_params=pltpu.CompilerParams(
            # Independent per-block partial sums -> grid axis can be sharded
            # across both v7x TensorCores (neutral on v5e/v6e).
            dimension_semantics=("parallel",),
            vmem_limit_bytes=vmem_limit,
        ),
    )(x2d, t2d)

    # Tiny finalize in XLA: sum partials, fold in alpha, mean divisor (original
    # element count, independent of any lane padding).
    return (jnp.float32(alpha) * jnp.sum(psums)) / jnp.float32(n_total)


def _ref_focal_loss(x, t, alpha=1.0, gamma=2.0):
    """Pure-JAX reference matching the PyTorch module (logits=False, reduce=True)."""
    x = x.astype(jnp.float32)
    t = t.astype(jnp.float32)
    log_p = jnp.maximum(jnp.log(x), -100.0)
    log_1mp = jnp.maximum(jnp.log(1.0 - x), -100.0)
    bce = -(t * log_p + (1.0 - t) * log_1mp)
    pt = jnp.exp(-bce)
    return jnp.mean(alpha * (1.0 - pt) ** gamma * bce)


if __name__ == "__main__":
    key = jax.random.PRNGKey(0)
    keys = jax.random.split(key, 6)

    def check(x, t, **kw):
        loss = focal_loss(x, t, alpha=1.0, gamma=2.0, **kw)
        jax.block_until_ready(loss)
        ref = _ref_focal_loss(x, t, 1.0, 2.0)
        assert jnp.allclose(loss, ref, rtol=1e-5, atol=1e-6), (kw, loss, ref)

    # 1) NCHW probabilities, lane-aligned (zero-copy reshape), single block.
    x1 = jax.nn.sigmoid(jax.random.normal(keys[0], (2, 4, 16, 16), dtype=jnp.float32))
    t1 = (jax.random.uniform(keys[1], (2, 4, 16, 16)) > 0.5).astype(jnp.float32)
    check(x1, t1)                        # exact PyTorch path (3 transcendentals)
    check(x1, t1, binary_targets=True)   # 1-transcendental hard-target path

    # 2) Ragged shape (element count not a multiple of 128): tiny zero-pad fallback.
    x2 = jax.nn.sigmoid(jax.random.normal(keys[2], (2, 3, 7, 5), dtype=jnp.float32))
    t2 = (jax.random.uniform(keys[3], (2, 3, 7, 5)) > 0.5).astype(jnp.float32)
    check(x2, t2)

    # 3) Multi-block grid with a partial last block (in-kernel iota mask path).
    x3 = jax.nn.sigmoid(jax.random.normal(keys[4], (2, 4, 40, 40), dtype=jnp.float32))
    t3 = (jax.random.uniform(keys[5], (2, 4, 40, 40)) > 0.5).astype(jnp.float32)
    check(x3, t3)
    check(x3, t3, binary_targets=True)

    print("KERNEL_OK")
</pallas_src>

<mosaic_0001>
module attributes {stable_mosaic.version = 11 : i64} {
  func.func @_focal_loss_kernel(%arg0: i32, %arg1: memref<16x128xf32, #tpu.memory_space<vmem>>, %arg2: memref<16x128xf32, #tpu.memory_space<vmem>>, %arg3: memref<1x1xf32, #tpu.memory_space<smem>>) attributes {dimension_semantics = [#tpu.dimension_semantics<parallel>], iteration_bounds = array<i64: 1>, scalar_prefetch = 0 : i64, scratch_operands = 0 : i64, tpu.core_type = #tpu.core_type<tc>, window_params = [{transform_indices = @transform_0, window_bounds = array<i64: 16, 128>}, {transform_indices = @transform_1, window_bounds = array<i64: 16, 128>}, {transform_indices = @transform_2, window_bounds = array<i64: 1, 1>}]} {
    %c0 = arith.constant 0 : index
    %c0_0 = arith.constant 0 : index
    %0 = vector.load %arg1[%c0, %c0_0] : memref<16x128xf32, #tpu.memory_space<vmem>>, vector<16x128xf32>
    %c0_1 = arith.constant 0 : index
    %c0_2 = arith.constant 0 : index
    %1 = vector.load %arg2[%c0_1, %c0_2] : memref<16x128xf32, #tpu.memory_space<vmem>>, vector<16x128xf32>
    %2 = math.log %0 : vector<16x128xf32>
    %cst = arith.constant -1.000000e+02 : f32
    %3 = vector.broadcast %cst : f32 to vector<16x128xf32>
    %4 = arith.maximumf %2, %3 : vector<16x128xf32>
    %cst_3 = arith.constant 1.000000e+00 : f32
    %5 = vector.broadcast %cst_3 : f32 to vector<16x128xf32>
    %6 = arith.subf %5, %0 : vector<16x128xf32>
    %7 = math.log %6 : vector<16x128xf32>
    %cst_4 = arith.constant -1.000000e+02 : f32
    %8 = vector.broadcast %cst_4 : f32 to vector<16x128xf32>
    %9 = arith.maximumf %7, %8 : vector<16x128xf32>
    %10 = arith.mulf %1, %4 : vector<16x128xf32>
    %cst_5 = arith.constant 1.000000e+00 : f32
    %11 = vector.broadcast %cst_5 : f32 to vector<16x128xf32>
    %12 = arith.subf %11, %1 : vector<16x128xf32>
    %13 = arith.mulf %12, %9 : vector<16x128xf32>
    %14 = arith.addf %10, %13 : vector<16x128xf32>
    %cst_6 = arith.constant 0.000000e+00 : f32
    %15 = vector.broadcast %cst_6 : f32 to vector<16x128xf32>
    %16 = arith.subf %15, %14 : vector<16x128xf32>
    %cst_7 = arith.constant 0.000000e+00 : f32
    %17 = vector.broadcast %cst_7 : f32 to vector<16x128xf32>
    %18 = arith.subf %17, %16 : vector<16x128xf32>
    %19 = math.exp %18 : vector<16x128xf32>
    %cst_8 = arith.constant 1.000000e+00 : f32
    %20 = vector.broadcast %cst_8 : f32 to vector<16x128xf32>
    %21 = arith.subf %20, %19 : vector<16x128xf32>
    %22 = arith.mulf %21, %21 : vector<16x128xf32>
    %23 = arith.mulf %22, %16 : vector<16x128xf32>
    %cst_9 = arith.constant dense<0.000000e+00> : vector<16xf32>
    %24 = vector.multi_reduction <add>, %23, %cst_9 [1] : vector<16x128xf32> to vector<16xf32>
    %25 = vector.shape_cast %24 : vector<16xf32> to vector<16x1xf32>
    %26 = vector.shape_cast %25 : vector<16x1xf32> to vector<1x16x1xf32>
    %cst_10 = arith.constant dense<0.000000e+00> : vector<1xf32>
    %27 = vector.multi_reduction <add>, %26, %cst_10 [1, 2] : vector<1x16x1xf32> to vector<1xf32>
    %28 = vector.shape_cast %27 : vector<1xf32> to vector<1x1x1xf32>
    %29 = vector.extract %28[0, 0, 0] : f32 from vector<1x1x1xf32>
    %c0_11 = arith.constant 0 : index
    %c0_12 = arith.constant 0 : index
    %30 = memref.load %arg3[%c0_11, %c0_12] : memref<1x1xf32, #tpu.memory_space<smem>>
    memref.store %29, %arg3[%c0_11, %c0_12] : memref<1x1xf32, #tpu.memory_space<smem>>
    return
  }
  func.func @transform_0(%arg0: i32) -> (i32, i32) {
    %c0_i32 = arith.constant 0 : i32
    %c0_i32_0 = arith.constant 0 : i32
    return %arg0, %c0_i32 : i32, i32
  }
  func.func @transform_1(%arg0: i32) -> (i32, i32) {
    %c0_i32 = arith.constant 0 : i32
    %c0_i32_0 = arith.constant 0 : i32
    return %arg0, %c0_i32 : i32, i32
  }
  func.func @transform_2(%arg0: i32) -> (i32, i32) {
    %c0_i32 = arith.constant 0 : i32
    %c0_i32_0 = arith.constant 0 : i32
    return %arg0, %c0_i32 : i32, i32
  }
}

</mosaic_0001>

<bundles_post_ra>
// kernel: tpu_custom_call.1
= control target key start
LH: loop header
LB: loop body
LE: loop exit
PB: predicated region body
PF: predicated region fallthrough
CT: control target
= control target key end

     0   :  { %7 = vsyncpa [#allocation3], 0  ;;  %s216_s0 = inlined_call_operand.hbm [shape: f32[16,128], index: 0, kind: input, shape index: {}]   ;;  %s217_s1 = inlined_call_operand.hbm [shape: f32[16,128], index: 1, kind: input, shape index: {}]   ;;  %s218_s2 = inlined_call_operand.hbm [shape: f32[1,1], index: 2, kind: output, shape index: {}]  }
   0x1   :  { %8 = vsyncpa [#allocation6], 0 }
   0x2   :  { %9 = vsyncpa [#allocation4], 0  ;;  %s187_s9 = smov [#allocation2]  }
   0x3   :  { %s15_s10 = sshll.u32 %s187_s9, 4  ;;  %s16_s10 = int_to_ptr.vmem [resolvable:$true] %s15_s10 }
   0x4   :  { %s141_s11 = scalar_lea.vmem %s16_s10, 256  ;;  %p146_p1 = scmp.lt.s32.totalorder %s16_s10, %s16_s10 }
   0x5   :  { %p142_p0 = scmp.ne.s32.totalorder %s16_s10, %s141_s11  ;;  %p147_p2 = scmp.lt.s32.totalorder %s141_s11, %s141_s11 }
   0x7   :  { %p148_p3 = por %p147_p2, %p146_p1 }
   0x9   :  { %p149_p4 = pnand %p148_p3, %p142_p0 }
   0xb   :  { %152 = shalt.err (!%p149_p4)
}
   0xc   :  { %s188_s12 = smov 128   ;;  %s189_s13 = smov 8  }
   0xd   :  { %21 = dma.hbm_to_vmem [thread:$0]  %s216_s0, 256, %s16_s10, [#allocation3], %s188_s12, %s188_s12, %s189_s13  }
   0xe   :  { %s190_s16 = smov [#allocation5]  }
   0xf   :  { %s27_s17 = sshll.u32 %s190_s16, 4  ;;  %s28_s17 = int_to_ptr.vmem [resolvable:$true] %s27_s17 }
  0x10   :  { %s161_s18 = scalar_lea.vmem %s28_s17, 256  ;;  %p166_p6 = scmp.lt.s32.totalorder %s28_s17, %s28_s17 }
  0x11   :  { %p162_p5 = scmp.ne.s32.totalorder %s28_s17, %s161_s18  ;;  %p167_p7 = scmp.lt.s32.totalorder %s161_s18, %s161_s18 }
  0x13   :  { %p168_p8 = por %p167_p7, %p166_p6 }
  0x15   :  { %p169_p9 = pnand %p168_p8, %p162_p5 }
  0x17   :  { %172 = shalt.err (!%p169_p9)
}
  0x18   :  { %33 = dma.hbm_to_vmem [thread:$0]  %s217_s1, 256, %s28_s17, [#allocation6], %s188_s12, %s188_s12, %s189_s13  }
  0x19   :  { %181 = dma.done.wait [#allocation3], 256  }
  0x1a   :  { %182 = vsyncadd [#allocation3], 4294967040 }
  0x1b   :  { %183 = dma.done.wait [#allocation6], 256  }
  0x1c   :  { %184 = vsyncadd [#allocation6], 4294967040  ;;  %v40_v0 = vld [vmem:[#allocation2] sm:$0xff]  ;;  %v41_v1 = vld [vmem:[#allocation2 + $0x8] sm:$0xff]  ;;  %vm84_vm0 = vcmask 7168   ;;  %s191_s1 = smov [#allocation7]  }
  0x1d   :  { %121 = vlog2.f32 %v40_v0  ;;  %v50_v2 = vsub.f32 1.0, %v40_v0  ;;  %v51_v3 = vsub.f32 1.0, %v41_v1  ;;  %v42_v5 = vld [vmem:[#allocation5] sm:$0xff]  ;;  %v43_v8 = vld [vmem:[#allocation5 + $0x8] sm:$0xff] }
  0x1e   :  { %123 = vlog2.f32 %v41_v1  ;;  %v60_v14 = vsub.f32 1.0, %v42_v5  ;;  %v61_v17 = vsub.f32 1.0, %v43_v8 }
  0x1f   :  { %125 = vlog2.f32 %v50_v2 }
  0x20   :  { %127 = vlog2.f32 %v51_v3 }
  0x2a   :  { %v122_v4 = vpop.eup %121 }
  0x2b   :  { %v124_v6 = vpop.eup %123  ;;  %v45_v7 = vmul.f32 0.6931472, %v122_v4 }
  0x2c   :  { %v126_v9 = vpop.eup %125  ;;  %v47_v10 = vmul.f32 0.6931472, %v124_v6 }
  0x2d   :  { %v128_v11 = vpop.eup %127  ;;  %v48_v12 = vmax.f32 %v45_v7, -100.0  ;;  %v53_v13 = vmul.f32 0.6931472, %v126_v9 }
  0x2e   :  { %v49_v15 = vmax.f32 %v47_v10, -100.0  ;;  %v55_v16 = vmul.f32 0.6931472, %v128_v11 }
  0x2f   :  { %v56_v18 = vmax.f32 %v53_v13, -100.0  ;;  %v58_v19 = vmul.f32 %v48_v12, %v42_v5 }
  0x30   :  { %v57_v20 = vmax.f32 %v55_v16, -100.0  ;;  %v59_v21 = vmul.f32 %v49_v15, %v43_v8 }
  0x31   :  { %v62_v22 = vmul.f32 %v60_v14, %v56_v18 }
  0x32   :  { %v63_v23 = vmul.f32 %v61_v17, %v57_v20 }
  0x33   :  { %v64_v24 = vadd.f32 %v62_v22, %v58_v19 }
  0x34   :  { %v65_v25 = vadd.f32 %v63_v23, %v59_v21 }
  0x35   :  { %v66_v26 = vsub.f32 0.0, %v64_v24 }
  0x36   :  { %v67_v27 = vsub.f32 0.0, %v65_v25 }
  0x37   :  { %v68_v28 = vsub.f32 0.0, %v66_v26 }
  0x38   :  { %v69_v29 = vsub.f32 0.0, %v67_v27 }
  0x39   :  { %v70_v30 = vmul.f32 1.442695, %v68_v28 }
  0x3a   :  { %v72_v31 = vmul.f32 1.442695, %v69_v29 }
  0x3b   :  { %129 = vpow2.f32 %v70_v30 }
  0x3c   :  { %131 = vpow2.f32 %v72_v31 }
  0x48   :  { %v130_v32 = vpop.eup %129 }
  0x49   :  { %v132_v33 = vpop.eup %131  ;;  %v74_v34 = vsub.f32 1.0, %v130_v32 }
  0x4a   :  { %v75_v35 = vsub.f32 1.0, %v132_v33 }
  0x4b   :  { %v76_v36 = vmul.f32 %v74_v34, %v74_v34 }
  0x4c   :  { %v77_v37 = vmul.f32 %v75_v35, %v75_v35 }
  0x4d   :  { %v78_v38 = vmul.f32 %v76_v36, %v66_v26 }
  0x4e   :  { %v79_v39 = vmul.f32 %v77_v37, %v67_v27 }
  0x4f   :  { %80 = vadd.xlane.f32.xlu0 %v78_v38 }
  0x53   :  { %82 = vadd.xlane.f32.xlu0 %v79_v39 }
  0xd8   :  { %v81_v40 = vpop.xlane.xlu0 %80 }
  0xd9   :  { %v85_v42 = vsel %vm84_vm0, %v81_v40, 0.0 }
  0xdc   :  { %v83_v41 = vpop.xlane.xlu0 %82 }
  0xdd   :  { %v86_v43 = vsel %vm84_vm0, %v83_v41, 0.0 }
  0xde   :  { %v87_v44 = vadd.f32 %v86_v43, %v85_v42 }
  0xe0   :  { %88 = vadd.xlane.f32.xlu1 %v87_v44 }
 0x169   :  { %v89_v45 = vpop.xlane.xlu1 %88 }
 0x16a   :  { %v90_v46 = vrot.slane %v89_v45, 4 }
 0x16c   :  { %v91_v47 = vadd.f32 %v90_v46, %v89_v45 }
 0x16e   :  { %v92_v48 = vrot.slane %v91_v47, 2 }
 0x170   :  { %v93_v49 = vadd.f32 %v92_v48, %v91_v47 }
 0x172   :  { %v94_v50 = vrot.slane %v93_v49, 1 }
 0x174   :  { %v95_v51 = vadd.f32 %v94_v50, %v93_v49 }
 0x176   :  { %114 = vpush %v95_v51 }
 0x1a7   :  { %s115_s0 = spop %114 }
 0x1a8   :  { %98 = sst [smem:[#allocation7]] %s115_s0 }
 0x1a9   :  { %106 = dma.smem_to_hbm %s191_s1, 16, %s218_s2, [#allocation4]  }
 0x1aa   :  { %185 = dma.done.wait [#allocation4], 16  }
 0x1ab   :  { %186 = vsyncadd [#allocation4], 4294967280 }
 0x1ac   :  { %110 = sfence }
 0x1ad   :  { %111 = vsyncpa [#allocation3], 1 }
 0x1ae   :  { %112 = vsyncpa [#allocation6], 1 }
 0x1af   :  { %113 = vsyncpa [#allocation4], 1 }

</bundles_post_ra>
